<compile_context>
chip_gen: v5e
topology: v5e:2x2
jax: 0.10.0
libtpu: 0.0.40
codegen_flags: <defaults>
</compile_context>

<pallas_src>
import functools

import jax
import jax.numpy as jnp
from jax.experimental import pallas as pl
from jax.experimental.pallas import tpu as pltpu

SELU_ALPHA = 1.6732632423543772
SELU_SCALE = 1.0507009873554805
SELU_SCALE_ALPHA = SELU_SCALE * SELU_ALPHA


def _selu(x):
    # Lean SELU: exp lands in the EUP slot (effectively free); everything else is
    # a handful of VALU ops. Matches F.selu to well within the bf16-matmul noise floor.
    return jnp.where(x > 0,
                     SELU_SCALE * x,
                     SELU_SCALE_ALPHA * jnp.exp(x) - SELU_SCALE_ALPHA)


def _autoencoder_kernel(n_layers, *refs):
    # refs = (x,
    #         wT_0..wT_{n-1},   encoder weights pre-transposed (in_pad, out_pad), bf16
    #         w_0..w_{n-1},     encoder weights original (out_pad, in_pad),        bf16
    #         b_enc_0..b_enc_{n-1}, b_dec_0..b_dec_{n-1},  f32 (1, width_pad) rows
    #         out)
    x_ref = refs[0]
    wT_refs = refs[1:1 + n_layers]
    w_refs = refs[1 + n_layers:1 + 2 * n_layers]
    be_refs = refs[1 + 2 * n_layers:1 + 3 * n_layers]
    bd_refs = refs[1 + 3 * n_layers:1 + 4 * n_layers]
    out_ref = refs[1 + 4 * n_layers]

    compute_dtype = wT_refs[0].dtype
    h = x_ref[...].astype(compute_dtype)

    # ---- encode:  h @ W^T  done as  h @ (pre-transposed W), no in-kernel transpose ----
    for i in range(n_layers):
        acc = jnp.dot(h, wT_refs[i][...], preferred_element_type=jnp.float32)
        h = _selu(acc + be_refs[i][...]).astype(compute_dtype)

    # ---- decode (tied weights: F.linear(x, w.t()) == x @ w, natural layout) ----
    h_f32 = None
    for i in range(n_layers):
        acc = jnp.dot(h, w_refs[n_layers - 1 - i][...], preferred_element_type=jnp.float32)
        h_f32 = _selu(acc + bd_refs[i][...])     # last_layer_activations=True
        if i + 1 < n_layers:
            h = h_f32.astype(compute_dtype)

    out_ref[...] = h_f32.astype(out_ref.dtype)


def _round_up(x, m):
    return (x + m - 1) // m * m


def _choose_batch_tile(B, max_tile):
    """Largest multiple-of-8 tile <= max_tile whose round-up of B wastes <~10% rows."""
    B8 = _round_up(B, 8)
    if B8 <= max_tile:
        return B8
    best_tb, best_waste = 8, None
    tb = (max_tile // 8) * 8
    while tb >= 8:
        waste = _round_up(B, tb) - B
        if waste * 10 <= B:          # <=10% padded rows: take the biggest acceptable tile
            return tb
        if best_waste is None or waste < best_waste:
            best_tb, best_waste = tb, waste
        tb -= 8
    return best_tb


def _pad2d(a, rows, cols):
    pr, pc = rows - a.shape[0], cols - a.shape[1]
    return jnp.pad(a, ((0, pr), (0, pc))) if (pr or pc) else a


def autoencoder_forward(x, enc_weights, enc_biases, dec_biases,
                        *, compute_dtype=jnp.bfloat16, max_batch_tile=2048):
    """Tied-weight autoencoder forward, fully fused in one Pallas kernel.

    x:            (B, layer_sizes[0]) float32
    enc_weights:  list of (layer_sizes[i+1], layer_sizes[i]) float32   (PyTorch layout)
    enc_biases:   list of (layer_sizes[i+1],) or (1, layer_sizes[i+1]) float32
    dec_biases:   list of (reversed_layer_sizes[i+1],) or (1, ...) float32
    """
    n_layers = len(enc_weights)
    assert n_layers >= 1, "need at least one encoder layer"
    B, d_in = x.shape
    assert dec_biases[-1].reshape(1, -1).shape[-1] == d_in

    # Layer widths and their 128-lane padded sizes.  Padding is numerically exact:
    # selu(0)=0 and zero rows/cols of the tied weight contribute nothing in either
    # matmul direction, so padded activation columns stay exactly zero end to end.
    widths = [enc_weights[0].shape[1]] + [w.shape[0] for w in enc_weights]
    assert widths[0] == d_in
    pw = [_round_up(w, 128) for w in widths]

    # Batch tile: multiple of 8 sublanes, capped, padding waste limited.  Padded rows
    # compute garbage and are sliced off below.
    tb = _choose_batch_tile(B, max_batch_tile)
    B_pad = _round_up(B, tb)
    grid = (B_pad // tb,)

    x_p = _pad2d(x, B_pad, pw[0])

    # Parameter prep done ONCE in the wrapper (not per grid step):
    #   * zero-pad every width to a multiple of 128 (lane-dense matmuls/stores)
    #   * both weight orientations -> no XLU transpose inside the kernel
    #   * matmul operands pre-cast to compute_dtype; biases stay f32 for the VPU/EUP path
    w_pad = [_pad2d(w.astype(jnp.float32), pw[i + 1], pw[i])
             for i, w in enumerate(enc_weights)]
    w_enc_T = [w.T.astype(compute_dtype) for w in w_pad]   # (in_pad, out_pad)
    w_dec = [w.astype(compute_dtype) for w in w_pad]       # (out_pad, in_pad)
    be = [_pad2d(b.reshape(1, -1).astype(jnp.float32), 1, pw[i + 1])
          for i, b in enumerate(enc_biases)]
    bd = [_pad2d(b.reshape(1, -1).astype(jnp.float32), 1, pw[n_layers - 1 - i])
          for i, b in enumerate(dec_biases)]

    batch_spec = pl.BlockSpec((tb, pw[0]), lambda i: (i, 0))
    resident = lambda i: (0, 0)
    in_specs = ([batch_spec]
                + [pl.BlockSpec(w.shape, resident) for w in w_enc_T]
                + [pl.BlockSpec(w.shape, resident) for w in w_dec]
                + [pl.BlockSpec(b.shape, resident) for b in be]
                + [pl.BlockSpec(b.shape, resident) for b in bd])

    # Advisory cost estimate so XLA can schedule surrounding ops sensibly.
    layer_macs = sum(int(w.shape[0]) * int(w.shape[1]) for w in w_pad)
    act_elems = sum(pw[1:]) + sum(pw[:-1])    # encode outputs + decode outputs per row
    param_bytes = (sum(int(w.size) * jnp.dtype(compute_dtype).itemsize
                       for w in (w_enc_T + w_dec))
                   + sum(int(b.size) * 4 for b in (be + bd)))
    cost = pl.CostEstimate(
        flops=4 * B_pad * layer_macs,          # 2 flops/MAC x (encode + decode)
        transcendentals=B_pad * act_elems,     # one exp per SELU output element
        bytes_accessed=2 * B_pad * pw[0] * 4 + param_bytes,
    )

    out = pl.pallas_call(
        functools.partial(_autoencoder_kernel, n_layers),
        out_shape=jax.ShapeDtypeStruct((B_pad, pw[0]), x.dtype),
        grid=grid,
        in_specs=in_specs,
        out_specs=batch_spec,
        compiler_params=pltpu.CompilerParams(
            dimension_semantics=("parallel",),   # megacore-shardable batch axis (v7x)
            vmem_limit_bytes=32 << 20,           # raise v5e's 16 MiB default; safe on v7x
        ),
        cost_estimate=cost,
    )(x_p, *w_enc_T, *w_dec, *be, *bd)

    if B_pad != B or pw[0] != d_in:
        out = out[:B, :d_in]
    return out


# ---------------------------------------------------------------------------
# Reference + test harness
# ---------------------------------------------------------------------------

def _xavier_uniform(key, shape):
    # torch.nn.init.xavier_uniform_ on a (fan_out, fan_in) weight matrix
    fan_out, fan_in = shape
    bound = (6.0 / (fan_in + fan_out)) ** 0.5
    return jax.random.uniform(key, shape, jnp.float32, minval=-bound, maxval=bound)


def _reference_forward(x, enc_weights, enc_biases, dec_biases, matmul_dtype=jnp.float32):
    # Pure-JAX reference mirroring the PyTorch module; optionally with bf16 matmul
    # operands + f32 accumulation (the kernel's compute path).
    h = x.astype(jnp.float32)
    for w, b in zip(enc_weights, enc_biases):
        acc = jnp.dot(h.astype(matmul_dtype), w.T.astype(matmul_dtype),
                      preferred_element_type=jnp.float32)
        h = _selu(acc + b.reshape(1, -1))
    for i, w in enumerate(reversed(enc_weights)):
        acc = jnp.dot(h.astype(matmul_dtype), w.astype(matmul_dtype),
                      preferred_element_type=jnp.float32)
        h = _selu(acc + dec_biases[i].reshape(1, -1))
    return h


if __name__ == "__main__":
    layer_sizes = [256, 128, 64]   # encoder 256->128->64 ; decoder (tied) 64->128->256
    batch = 8
    n_layers = len(layer_sizes) - 1

    key = jax.random.PRNGKey(0)
    keys = jax.random.split(key, n_layers + 1)

    # Deterministic params matching the module __init__ (xavier weights, zero biases).
    enc_weights = [
        _xavier_uniform(keys[i], (layer_sizes[i + 1], layer_sizes[i]))
        for i in range(n_layers)
    ]
    enc_biases = [jnp.zeros((1, layer_sizes[i + 1]), jnp.float32) for i in range(n_layers)]
    rev = list(reversed(layer_sizes))
    dec_biases = [jnp.zeros((1, rev[i + 1]), jnp.float32) for i in range(n_layers)]

    x = jax.random.normal(keys[-1], (batch, layer_sizes[0]), jnp.float32)

    out = autoencoder_forward(x, enc_weights, enc_biases, dec_biases)
    out = jax.block_until_ready(out)
    assert out.shape == (batch, layer_sizes[0])

    # Tight check against a reference using the same bf16-operand / f32-accum path ...
    ref_bf16 = _reference_forward(x, enc_weights, enc_biases, dec_biases,
                                  matmul_dtype=jnp.bfloat16)
    assert jnp.allclose(out, ref_bf16, atol=5e-3, rtol=5e-3), \
        float(jnp.max(jnp.abs(out - ref_bf16)))

    # ... and a loose check against the full-f32 PyTorch-equivalent reference.
    ref_f32 = _reference_forward(x, enc_weights, enc_biases, dec_biases,
                                 matmul_dtype=jnp.float32)
    assert jnp.allclose(out, ref_f32, atol=5e-2, rtol=5e-2), \
        float(jnp.max(jnp.abs(out - ref_f32)))

    print("KERNEL_OK")
</pallas_src>

<mosaic_0001>
module attributes {stable_mosaic.version = 11 : i64} {
  func.func @_autoencoder_kernel(%arg0: i32, %arg1: memref<8x256xf32, #tpu.memory_space<vmem>>, %arg2: memref<256x128xbf16, #tpu.memory_space<vmem>>, %arg3: memref<128x128xbf16, #tpu.memory_space<vmem>>, %arg4: memref<128x256xbf16, #tpu.memory_space<vmem>>, %arg5: memref<128x128xbf16, #tpu.memory_space<vmem>>, %arg6: memref<1x128xf32, #tpu.memory_space<vmem>>, %arg7: memref<1x128xf32, #tpu.memory_space<vmem>>, %arg8: memref<1x128xf32, #tpu.memory_space<vmem>>, %arg9: memref<1x256xf32, #tpu.memory_space<vmem>>, %arg10: memref<8x256xf32, #tpu.memory_space<vmem>>) attributes {dimension_semantics = [#tpu.dimension_semantics<parallel>], iteration_bounds = array<i64: 1>, scalar_prefetch = 0 : i64, scratch_operands = 0 : i64, tpu.core_type = #tpu.core_type<tc>, window_params = [{transform_indices = @transform_0, window_bounds = array<i64: 8, 256>}, {pipeline_mode = #tpu.pipeline_mode<synchronous>, transform_indices = @transform_1, window_bounds = array<i64: 256, 128>}, {pipeline_mode = #tpu.pipeline_mode<synchronous>, transform_indices = @transform_2, window_bounds = array<i64: 128, 128>}, {pipeline_mode = #tpu.pipeline_mode<synchronous>, transform_indices = @transform_3, window_bounds = array<i64: 128, 256>}, {pipeline_mode = #tpu.pipeline_mode<synchronous>, transform_indices = @transform_4, window_bounds = array<i64: 128, 128>}, {pipeline_mode = #tpu.pipeline_mode<synchronous>, transform_indices = @transform_5, window_bounds = array<i64: 1, 128>}, {pipeline_mode = #tpu.pipeline_mode<synchronous>, transform_indices = @transform_6, window_bounds = array<i64: 1, 128>}, {pipeline_mode = #tpu.pipeline_mode<synchronous>, transform_indices = @transform_7, window_bounds = array<i64: 1, 128>}, {pipeline_mode = #tpu.pipeline_mode<synchronous>, transform_indices = @transform_8, window_bounds = array<i64: 1, 256>}, {transform_indices = @transform_9, window_bounds = array<i64: 8, 256>}]} {
    %c0 = arith.constant 0 : index
    %c0_0 = arith.constant 0 : index
    %0 = vector.load %arg1[%c0, %c0_0] : memref<8x256xf32, #tpu.memory_space<vmem>>, vector<8x256xf32>
    %1 = arith.truncf %0 : vector<8x256xf32> to vector<8x256xbf16>
    %c0_1 = arith.constant 0 : index
    %c0_2 = arith.constant 0 : index
    %2 = vector.load %arg2[%c0_1, %c0_2] : memref<256x128xbf16, #tpu.memory_space<vmem>>, vector<256x128xbf16>
    %cst = arith.constant dense<0.000000e+00> : vector<8x128xf32>
    %3 = tpu.matmul %1, %2, %cst {dimension_numbers = #tpu.dot_dimension_numbers<[1], [0], [0], [1], [0, 0, 1, 1], [], []>} : vector<8x256xbf16>, vector<256x128xbf16>, vector<8x128xf32> -> vector<8x128xf32>
    %c0_3 = arith.constant 0 : index
    %c0_4 = arith.constant 0 : index
    %4 = vector.load %arg6[%c0_3, %c0_4] : memref<1x128xf32, #tpu.memory_space<vmem>>, vector<1x128xf32>
    %5 = vector.broadcast %4 : vector<1x128xf32> to vector<8x128xf32>
    %6 = arith.addf %3, %5 : vector<8x128xf32>
    %cst_5 = arith.constant 0.000000e+00 : f32
    %7 = vector.broadcast %cst_5 : f32 to vector<8x128xf32>
    %8 = arith.cmpf ogt, %6, %7 : vector<8x128xf32>
    %cst_6 = arith.constant 1.05070102 : f32
    %9 = vector.broadcast %cst_6 : f32 to vector<8x128xf32>
    %10 = arith.mulf %9, %6 : vector<8x128xf32>
    %11 = math.exp %6 : vector<8x128xf32>
    %cst_7 = arith.constant 1.75809932 : f32
    %12 = vector.broadcast %cst_7 : f32 to vector<8x128xf32>
    %13 = arith.mulf %12, %11 : vector<8x128xf32>
    %cst_8 = arith.constant 1.75809932 : f32
    %14 = vector.broadcast %cst_8 : f32 to vector<8x128xf32>
    %15 = arith.subf %13, %14 : vector<8x128xf32>
    %16 = arith.select %8, %10, %15 : vector<8x128xi1>, vector<8x128xf32>
    %17 = arith.truncf %16 : vector<8x128xf32> to vector<8x128xbf16>
    %c0_9 = arith.constant 0 : index
    %c0_10 = arith.constant 0 : index
    %18 = vector.load %arg3[%c0_9, %c0_10] : memref<128x128xbf16, #tpu.memory_space<vmem>>, vector<128x128xbf16>
    %cst_11 = arith.constant dense<0.000000e+00> : vector<8x128xf32>
    %19 = tpu.matmul %17, %18, %cst_11 {dimension_numbers = #tpu.dot_dimension_numbers<[1], [0], [0], [1], [0, 0, 1, 1], [], []>} : vector<8x128xbf16>, vector<128x128xbf16>, vector<8x128xf32> -> vector<8x128xf32>
    %c0_12 = arith.constant 0 : index
    %c0_13 = arith.constant 0 : index
    %20 = vector.load %arg7[%c0_12, %c0_13] : memref<1x128xf32, #tpu.memory_space<vmem>>, vector<1x128xf32>
    %21 = vector.broadcast %20 : vector<1x128xf32> to vector<8x128xf32>
    %22 = arith.addf %19, %21 : vector<8x128xf32>
    %cst_14 = arith.constant 0.000000e+00 : f32
    %23 = vector.broadcast %cst_14 : f32 to vector<8x128xf32>
    %24 = arith.cmpf ogt, %22, %23 : vector<8x128xf32>
    %cst_15 = arith.constant 1.05070102 : f32
    %25 = vector.broadcast %cst_15 : f32 to vector<8x128xf32>
    %26 = arith.mulf %25, %22 : vector<8x128xf32>
    %27 = math.exp %22 : vector<8x128xf32>
    %cst_16 = arith.constant 1.75809932 : f32
    %28 = vector.broadcast %cst_16 : f32 to vector<8x128xf32>
    %29 = arith.mulf %28, %27 : vector<8x128xf32>
    %cst_17 = arith.constant 1.75809932 : f32
    %30 = vector.broadcast %cst_17 : f32 to vector<8x128xf32>
    %31 = arith.subf %29, %30 : vector<8x128xf32>
    %32 = arith.select %24, %26, %31 : vector<8x128xi1>, vector<8x128xf32>
    %33 = arith.truncf %32 : vector<8x128xf32> to vector<8x128xbf16>
    %c0_18 = arith.constant 0 : index
    %c0_19 = arith.constant 0 : index
    %34 = vector.load %arg5[%c0_18, %c0_19] : memref<128x128xbf16, #tpu.memory_space<vmem>>, vector<128x128xbf16>
    %cst_20 = arith.constant dense<0.000000e+00> : vector<8x128xf32>
    %35 = tpu.matmul %33, %34, %cst_20 {dimension_numbers = #tpu.dot_dimension_numbers<[1], [0], [0], [1], [0, 0, 1, 1], [], []>} : vector<8x128xbf16>, vector<128x128xbf16>, vector<8x128xf32> -> vector<8x128xf32>
    %c0_21 = arith.constant 0 : index
    %c0_22 = arith.constant 0 : index
    %36 = vector.load %arg8[%c0_21, %c0_22] : memref<1x128xf32, #tpu.memory_space<vmem>>, vector<1x128xf32>
    %37 = vector.broadcast %36 : vector<1x128xf32> to vector<8x128xf32>
    %38 = arith.addf %35, %37 : vector<8x128xf32>
    %cst_23 = arith.constant 0.000000e+00 : f32
    %39 = vector.broadcast %cst_23 : f32 to vector<8x128xf32>
    %40 = arith.cmpf ogt, %38, %39 : vector<8x128xf32>
    %cst_24 = arith.constant 1.05070102 : f32
    %41 = vector.broadcast %cst_24 : f32 to vector<8x128xf32>
    %42 = arith.mulf %41, %38 : vector<8x128xf32>
    %43 = math.exp %38 : vector<8x128xf32>
    %cst_25 = arith.constant 1.75809932 : f32
    %44 = vector.broadcast %cst_25 : f32 to vector<8x128xf32>
    %45 = arith.mulf %44, %43 : vector<8x128xf32>
    %cst_26 = arith.constant 1.75809932 : f32
    %46 = vector.broadcast %cst_26 : f32 to vector<8x128xf32>
    %47 = arith.subf %45, %46 : vector<8x128xf32>
    %48 = arith.select %40, %42, %47 : vector<8x128xi1>, vector<8x128xf32>
    %49 = arith.truncf %48 : vector<8x128xf32> to vector<8x128xbf16>
    %c0_27 = arith.constant 0 : index
    %c0_28 = arith.constant 0 : index
    %50 = vector.load %arg4[%c0_27, %c0_28] : memref<128x256xbf16, #tpu.memory_space<vmem>>, vector<128x256xbf16>
    %cst_29 = arith.constant dense<0.000000e+00> : vector<8x256xf32>
    %51 = tpu.matmul %49, %50, %cst_29 {dimension_numbers = #tpu.dot_dimension_numbers<[1], [0], [0], [1], [0, 0, 1, 1], [], []>} : vector<8x128xbf16>, vector<128x256xbf16>, vector<8x256xf32> -> vector<8x256xf32>
    %c0_30 = arith.constant 0 : index
    %c0_31 = arith.constant 0 : index
    %52 = vector.load %arg9[%c0_30, %c0_31] : memref<1x256xf32, #tpu.memory_space<vmem>>, vector<1x256xf32>
    %53 = vector.broadcast %52 : vector<1x256xf32> to vector<8x256xf32>
    %54 = arith.addf %51, %53 : vector<8x256xf32>
    %cst_32 = arith.constant 0.000000e+00 : f32
    %55 = vector.broadcast %cst_32 : f32 to vector<8x256xf32>
    %56 = arith.cmpf ogt, %54, %55 : vector<8x256xf32>
    %cst_33 = arith.constant 1.05070102 : f32
    %57 = vector.broadcast %cst_33 : f32 to vector<8x256xf32>
    %58 = arith.mulf %57, %54 : vector<8x256xf32>
    %59 = math.exp %54 : vector<8x256xf32>
    %cst_34 = arith.constant 1.75809932 : f32
    %60 = vector.broadcast %cst_34 : f32 to vector<8x256xf32>
    %61 = arith.mulf %60, %59 : vector<8x256xf32>
    %cst_35 = arith.constant 1.75809932 : f32
    %62 = vector.broadcast %cst_35 : f32 to vector<8x256xf32>
    %63 = arith.subf %61, %62 : vector<8x256xf32>
    %64 = arith.select %56, %58, %63 : vector<8x256xi1>, vector<8x256xf32>
    %c0_36 = arith.constant 0 : index
    %c0_37 = arith.constant 0 : index
    %65 = vector.load %arg10[%c0_36, %c0_37] : memref<8x256xf32, #tpu.memory_space<vmem>>, vector<8x256xf32>
    tpu.vector_store %arg10[%c0_36, %c0_37], %64 {strides = array<i32>} : memref<8x256xf32, #tpu.memory_space<vmem>>, vector<8x256xf32>,
    return
  }
  func.func @transform_0(%arg0: i32) -> (i32, i32) {
    %c0_i32 = arith.constant 0 : i32
    %c0_i32_0 = arith.constant 0 : i32
    return %arg0, %c0_i32 : i32, i32
  }
  func.func @transform_1(%arg0: i32) -> (i32, i32) {
    %c0_i32 = arith.constant 0 : i32
    %c0_i32_0 = arith.constant 0 : i32
    %c0_i32_1 = arith.constant 0 : i32
    return %c0_i32, %c0_i32_0 : i32, i32
  }
  func.func @transform_2(%arg0: i32) -> (i32, i32) {
    %c0_i32 = arith.constant 0 : i32
    %c0_i32_0 = arith.constant 0 : i32
    %c0_i32_1 = arith.constant 0 : i32
    return %c0_i32, %c0_i32_0 : i32, i32
  }
  func.func @transform_3(%arg0: i32) -> (i32, i32) {
    %c0_i32 = arith.constant 0 : i32
    %c0_i32_0 = arith.constant 0 : i32
    %c0_i32_1 = arith.constant 0 : i32
    return %c0_i32, %c0_i32_0 : i32, i32
  }
  func.func @transform_4(%arg0: i32) -> (i32, i32) {
    %c0_i32 = arith.constant 0 : i32
    %c0_i32_0 = arith.constant 0 : i32
    %c0_i32_1 = arith.constant 0 : i32
    return %c0_i32, %c0_i32_0 : i32, i32
  }
  func.func @transform_5(%arg0: i32) -> (i32, i32) {
    %c0_i32 = arith.constant 0 : i32
    %c0_i32_0 = arith.constant 0 : i32
    %c0_i32_1 = arith.constant 0 : i32
    return %c0_i32, %c0_i32_0 : i32, i32
  }
  func.func @transform_6(%arg0: i32) -> (i32, i32) {
    %c0_i32 = arith.constant 0 : i32
    %c0_i32_0 = arith.constant 0 : i32
    %c0_i32_1 = arith.constant 0 : i32
    return %c0_i32, %c0_i32_0 : i32, i32
  }
  func.func @transform_7(%arg0: i32) -> (i32, i32) {
    %c0_i32 = arith.constant 0 : i32
    %c0_i32_0 = arith.constant 0 : i32
    %c0_i32_1 = arith.constant 0 : i32
    return %c0_i32, %c0_i32_0 : i32, i32
  }
  func.func @transform_8(%arg0: i32) -> (i32, i32) {
    %c0_i32 = arith.constant 0 : i32
    %c0_i32_0 = arith.constant 0 : i32
    %c0_i32_1 = arith.constant 0 : i32
    return %c0_i32, %c0_i32_0 : i32, i32
  }
  func.func @transform_9(%arg0: i32) -> (i32, i32) {
    %c0_i32 = arith.constant 0 : i32
    %c0_i32_0 = arith.constant 0 : i32
    return %arg0, %c0_i32 : i32, i32
  }
}

</mosaic_0001>

<bundles_post_ra>
// kernel: tpu_custom_call.1
= control target key start
LH: loop header
LB: loop body
LE: loop exit
PB: predicated region body
PF: predicated region fallthrough
CT: control target
= control target key end

     0   :  { %14 = vsyncpa [#allocation3], 0  ;;  %s1139_s0 = inlined_call_operand.hbm [shape: f32[8,256], index: 0, kind: input, shape index: {}]   ;;  %s1140_s1 = inlined_call_operand.hbm [shape: bf16[256,128], index: 1, kind: input, shape index: {}]   ;;  %s1141_s2 = inlined_call_operand.hbm [shape: bf16[128,128], index: 2, kind: input, shape index: {}]   ;;  %s1142_s3 = inlined_call_operand.hbm [shape: bf16[128,256], index: 3, kind: input, shape index: {}]   ;;  %s1143_s4 = inlined_call_operand.hbm [shape: bf16[128,128], index: 4, kind: input, shape index: {}]   ;;  %s1144_s5 = inlined_call_operand.vmem [shape: f32[1,128], index: 5, kind: input, shape index: {}]   ;;  %s1145_s6 = inlined_call_operand.vmem [shape: f32[1,128], index: 6, kind: input, shape index: {}]   ;;  %s1146_s7 = inlined_call_operand.vmem [shape: f32[1,128], index: 7, kind: input, shape index: {}]   ;;  %s1147_s8 = inlined_call_operand.vmem [shape: f32[1,256], index: 8, kind: input, shape index: {}]   ;;  %s1148_s9 = inlined_call_operand.hbm [shape: f32[8,256], index: 9, kind: output, shape index: {}]  }
   0x1   :  { %15 = vsyncpa [#allocation6], 0 }
   0x2   :  { %16 = vsyncpa [#allocation9], 0  ;;  %s33_s11 = sshll.u32 %s1140_s1, 4  ;;  %s34_s11 = int_to_ptr.hbm [resolvable:$true] %s33_s11 }
   0x3   :  { %17 = vsyncpa [#allocation4], 0  ;;  %s1040_s12 = smov [#allocation5]   ;;  %s59_s16 = sshll.u32 %s1142_s3, 4  ;;  %s60_s16 = int_to_ptr.hbm [resolvable:$true] %s59_s16 }
   0x4   :  { %s35_s13 = sshll.u32 %s1040_s12, 4  ;;  %s1041_s17 = smov 64   ;;  %s36_s13 = int_to_ptr.vmem [resolvable:$true] %s35_s13 }
   0x5   :  { %s1042_s18 = smov 4   ;;  %s1043_s19 = smov [#allocation8]  }
   0x6   :  { %41 = dma.hbm_to_vmem [thread:$0]  %s34_s11, 2048, %s36_s13, [#allocation6], %s1041_s17, %s1041_s17, %s1042_s18  }
   0x7   :  { %s61_s20 = sshll.u32 %s1043_s19, 4  ;;  %s1044_s1 = smov 128   ;;  %s62_s20 = int_to_ptr.vmem [resolvable:$true] %s61_s20 }
   0x8   :  { %s1045_s21 = smov 8   ;;  %s23_s24 = sshll.u32 %s1139_s0, 4  ;;  %s24_s24 = int_to_ptr.hbm [resolvable:$true] %s23_s24 }
   0x9   :  { %67 = dma.hbm_to_vmem [thread:$0]  %s60_s16, 2048, %s62_s20, [#allocation9], %s1044_s1, %s1044_s1, %s1045_s21  }
   0xa   :  { %s1046_s25 = smov [#allocation2]   ;;  %s46_s28 = sshll.u32 %s1141_s2, 4  ;;  %s47_s28 = int_to_ptr.hbm [resolvable:$true] %s46_s28 }
   0xb   :  { %s25_s3 = sshll.u32 %s1046_s25, 4  ;;  %s1047_s29 = smov [#allocation7]   ;;  %s26_s3 = int_to_ptr.vmem [resolvable:$true] %s25_s3 }
   0xc   :  { %28 = dma.hbm_to_vmem [thread:$0]  %s24_s24, 256, %s26_s3, [#allocation3]  }
   0xd   :  { %s48_s30 = sshll.u32 %s1047_s29, 4  ;;  %s72_s12 = sshll.u32 %s1143_s4, 4  ;;  %s49_s30 = int_to_ptr.vmem [resolvable:$true] %s48_s30  ;;  %s73_s12 = int_to_ptr.hbm [resolvable:$true] %s72_s12 }
   0xe   :  { %54 = dma.hbm_to_vmem [thread:$0]  %s47_s28, 1024, %s49_s30, [#allocation6], %s1041_s17, %s1041_s17, %s1042_s18  }
   0xf   :  { %s1048_s0 = smov [#allocation10]  }
  0x10   :  { %s74_s13 = sshll.u32 %s1048_s0, 4  ;;  %s75_s13 = int_to_ptr.vmem [resolvable:$true] %s74_s13 }
  0x11   :  { %80 = dma.hbm_to_vmem [thread:$0]  %s73_s12, 1024, %s75_s13, [#allocation9], %s1041_s17, %s1041_s17, %s1042_s18  }
  0x12   :  { %1032 = dma.done.wait [#allocation3], 256  }
  0x13   :  { %1033 = vsyncadd [#allocation3], 4294967040 }
  0x14   :  { %1034 = dma.done.wait [#allocation6], 3072  }
  0x15   :  { %1035 = vsyncadd [#allocation6], 4294964224 }
  0x16   :  { %1036 = dma.done.wait [#allocation9], 3072  }
  0x17   :  { %1037 = vsyncadd [#allocation9], 4294964224  ;;  %v824_v0 = vld [vmem:[#allocation5 + $0x38] sm:$0xff]  ;;  %v823_v2 = vld [vmem:[#allocation5 + $0x30] sm:$0xff]  ;;  %s608_s20 = sshll.u32 %s1148_s9, 4  ;;  %s609_s20 = int_to_ptr.hbm [resolvable:$true] %s608_s20 }
  0x18   :  { %v832_v1 = vld [vmem:[#allocation5 + $0x78] sm:$0xff]  ;;  %245 = vmatpush.bf16.msra.mxu0 %v824_v0  ;;  %v831_v3 = vld [vmem:[#allocation5 + $0x70] sm:$0xff]  ;;  %v822_v4 = vld [vmem:[#allocation5 + $0x28] sm:$0xff] }
  0x19   :  { %258 = vmatpush.bf16.msra.mxu1 %v832_v1  ;;  %v830_v5 = vld [vmem:[#allocation5 + $0x68] sm:$0xff]  ;;  %v840_v6 = vld [vmem:[#allocation7 + $0x38] sm:$0xff]  ;;  %v839_v7 = vld [vmem:[#allocation7 + $0x30] sm:$0xff] }
  0x1a   :  { %347 = vmatpush.bf16.msra.mxu2 %v840_v6  ;;  %v821_v8 = vld [vmem:[#allocation5 + $0x20] sm:$0xff]  ;;  %v838_v10 = vld [vmem:[#allocation7 + $0x28] sm:$0xff]  ;;  %v820_v11 = vld [vmem:[#allocation5 + $0x18] sm:$0xff] }
  0x1b   :  { %v829_v9 = vld [vmem:[#allocation5 + $0x60] sm:$0xff]  ;;  %v828_v12 = vld [vmem:[#allocation5 + $0x58] sm:$0xff]  ;;  %v819_v13 = vld [vmem:[#allocation5 + $0x10] sm:$0xff] }
  0x1c   :  { %246 = vmatpush.bf16.msra.mxu0 %v823_v2  ;;  %v827_v14 = vld [vmem:[#allocation5 + $0x50] sm:$0xff]  ;;  %v818_v15 = vld [vmem:[#allocation5 + $0x8] sm:$0xff]  ;;  %v817_v17 = vld [vmem:[#allocation5] sm:$0xff] }
  0x1d   :  { %259 = vmatpush.bf16.msra.mxu1 %v831_v3  ;;  %v826_v16 = vld [vmem:[#allocation5 + $0x48] sm:$0xff]  ;;  %v825_v18 = vld [vmem:[#allocation5 + $0x40] sm:$0xff]  ;;  %v109_v19 = vld [vmem:[#allocation2] sm:$0xff] }
  0x1e   :  { %348 = vmatpush.bf16.msra.mxu2 %v839_v7  ;;  %v110_v20 = vld [vmem:[#allocation2 + $0x8] sm:$0xff]  ;;  %v111_v21 = vpack.c.bf16 %v109_v19, %v109_v19  ;;  %v837_v23 = vld [vmem:[#allocation7 + $0x20] sm:$0xff]  ;;  %v835_v25 = vld [vmem:[#allocation7 + $0x10] sm:$0xff] }
  0x1f   :  { %v112_v22 = vpack.c.bf16 %v110_v20, %v110_v20  ;;  %v836_v24 = vld [vmem:[#allocation7 + $0x18] sm:$0xff]  ;;  %v834_v26 = vld [vmem:[#allocation7 + $0x8] sm:$0xff]  ;;  %v833_v27 = vld [vmem:[#allocation7] sm:$0xff] }
  0x20   :  { %247 = vmatpush.bf16.msra.mxu0 %v822_v4  ;;  %v848_v28 = vld [vmem:[#allocation10 + $0x38] sm:$0xff]  ;;  %v847_v29 = vld [vmem:[#allocation10 + $0x30] sm:$0xff]  ;;  %v846_v30 = vld [vmem:[#allocation10 + $0x28] sm:$0xff] }
  0x21   :  { %260 = vmatpush.bf16.msra.mxu1 %v830_v5  ;;  %436 = vmatpush.bf16.msra.mxu3 %v848_v28  ;;  %v875_v31 = vld [vmem:[%s1144_s5] ss:$0 sm:$0xff]  ;;  %v845_v45 = vld [vmem:[#allocation10 + $0x20] sm:$0xff]  ;;  %v844_v46 = vld [vmem:[#allocation10 + $0x18] sm:$0xff] }
  0x22   :  { %349 = vmatpush.bf16.msra.mxu2 %v838_v10  ;;  %v843_v47 = vld [vmem:[#allocation10 + $0x10] sm:$0xff]  ;;  %v842_v48 = vld [vmem:[#allocation10 + $0x8] sm:$0xff]  ;;  %v841_v49 = vld [vmem:[#allocation10] sm:$0xff] }
  0x23   :  { %v809_v50 = vld [vmem:[#allocation8 + $0x70] sm:$0xf]  ;;  %v864_v51 = vld [vmem:[#allocation8 + $0x74] sm:$0xf0]  ;;  %v863_v52 = vld [vmem:[#allocation8 + $0x74] sm:$0xf] }
  0x24   :  { %248 = vmatpush.bf16.msra.mxu0 %v821_v8  ;;  %v810_v53 = vor.u32 %v864_v51, %v809_v50  ;;  %v811_v54 = vld [vmem:[#allocation8 + $0x78] sm:$0xf0]  ;;  %v801_v55 = vld [vmem:[#allocation8 + $0x60] sm:$0xf]  ;;  %v862_v56 = vld [vmem:[#allocation8 + $0x64] sm:$0xf0] }
  0x25   :  { %261 = vmatpush.bf16.msra.mxu1 %v829_v9  ;;  %437 = vmatpush.bf16.msra.mxu3 %v847_v29  ;;  %v814_v57 = vor.u32 %v863_v52, %v811_v54  ;;  %v861_v58 = vld [vmem:[#allocation8 + $0x64] sm:$0xf]  ;;  %v803_v59 = vld [vmem:[#allocation8 + $0x68] sm:$0xf0]  ;;  %v802_v60 = vor.u32 %v862_v56, %v801_v55  ;;  %v793_v62 = vld [vmem:[#allocation8 + $0x50] sm:$0xf] }
  0x26   :  { %350 = vmatpush.bf16.msra.mxu2 %v837_v23  ;;  %v806_v61 = vor.u32 %v861_v58, %v803_v59  ;;  %v860_v63 = vld [vmem:[#allocation8 + $0x54] sm:$0xf0]  ;;  %v859_v0 = vld [vmem:[#allocation8 + $0x54] sm:$0xf]  ;;  %v795_v1 = vld [vmem:[#allocation8 + $0x58] sm:$0xf0] }
  0x27   :  { %v794_v2 = vor.u32 %v860_v63, %v793_v62  ;;  %v798_v3 = vor.u32 %v859_v0, %v795_v1  ;;  %v876_v4 = vld [vmem:[%s1145_s6] ss:$0 sm:$0xff]  ;;  %v787_v19 = vld [vmem:[#allocation8 + $0x48] sm:$0xf0]  ;;  %v855_v23 = vld [vmem:[#allocation8 + $0x34] sm:$0xf] }
  0x28   :  { %249 = vmatpush.bf16.msra.mxu0 %v820_v11  ;;  %v854_v28 = vld [vmem:[#allocation8 + $0x24] sm:$0xf0]  ;;  %v853_v29 = vld [vmem:[#allocation8 + $0x24] sm:$0xf]  ;;  %v473_v56 = vld [vmem:[%s1147_s8] sm:$0x3] }
  0x29   :  { %262 = vmatpush.bf16.msra.mxu1 %v828_v12  ;;  %438 = vmatpush.bf16.msra.mxu3 %v846_v30  ;;  %v476_v58 = vperm.slane %v473_v56, 1 }
  0x2a   :  { %351 = vmatpush.bf16.msra.mxu2 %v836_v24 }
  0x2c   :  { %250 = vmatpush.bf16.msra.mxu0 %v819_v13 }
  0x2d   :  { %263 = vmatpush.bf16.msra.mxu1 %v827_v14  ;;  %439 = vmatpush.bf16.msra.mxu3 %v845_v45  ;;  %v877_v45 = vld [vmem:[%s1146_s7] ss:$0 sm:$0xff]  ;;  %s1049_s7 = smov [#allocation11]  }
  0x2e   :  { %352 = vmatpush.bf16.msra.mxu2 %v835_v25  ;;  %v779_v25 = vld [vmem:[#allocation8 + $0x38] sm:$0xf0]  ;;  %s606_s18 = sshll.u32 %s1049_s7, 4  ;;  %s607_s18 = int_to_ptr.vmem [resolvable:$true] %s606_s18 }
  0x30   :  { %251 = vmatpush.bf16.msra.mxu0 %v818_v15  ;;  %v785_v15 = vld [vmem:[#allocation8 + $0x40] sm:$0xf] }
  0x31   :  { %264 = vmatpush.bf16.msra.mxu1 %v826_v16  ;;  %440 = vmatpush.bf16.msra.mxu3 %v844_v46  ;;  %v858_v16 = vld [vmem:[#allocation8 + $0x44] sm:$0xf0] }
  0x32   :  { %353 = vmatpush.bf16.msra.mxu2 %v834_v26  ;;  %v782_v26 = vor.u32 %v855_v23, %v779_v25 }
  0x34   :  { %252 = vmatpush.bf16.msra.mxu0 %v817_v17  ;;  %v857_v17 = vld [vmem:[#allocation8 + $0x44] sm:$0xf] }
  0x35   :  { %265 = vmatpush.bf16.msra.mxu1 %v825_v18  ;;  %441 = vmatpush.bf16.msra.mxu3 %v843_v47  ;;  %v786_v18 = vor.u32 %v858_v16, %v785_v15  ;;  %v790_v20 = vor.u32 %v857_v17, %v787_v19 }
  0x36   :  { %354 = vmatpush.bf16.msra.mxu2 %v833_v27  ;;  %v769_v27 = vld [vmem:[#allocation8 + $0x20] sm:$0xf] }
  0x37   :  { %253 = vmatmul.bf16.vlgmr.msra.gmra.mxu0 %v111_v21  ;;  %v777_v21 = vld [vmem:[#allocation8 + $0x30] sm:$0xf]  ;;  %v770_v30 = vor.u32 %v854_v28, %v769_v27 }
  0x38   :  { %266 = vmatmul.bf16.vlgmr.msra.gmra.mxu1 %v112_v22  ;;  %559 = vmatpush.bf16.msrb.mxu0 %v810_v53  ;;  %v856_v22 = vld [vmem:[#allocation8 + $0x34] sm:$0xf0] }
  0x39   :  { %442 = vmatpush.bf16.msra.mxu3 %v842_v48  ;;  %572 = vmatpush.bf16.msrb.mxu1 %v814_v57  ;;  %v778_v24 = vor.u32 %v856_v22, %v777_v21  ;;  %v475_v57 = vperm.slane %v473_v56, 0 }
  0x3c   :  { %560 = vmatpush.bf16.msrb.mxu0 %v802_v60 }
  0x3d   :  { %443 = vmatpush.bf16.msra.mxu3 %v841_v49  ;;  %573 = vmatpush.bf16.msrb.mxu1 %v806_v61 }
  0x40   :  { %561 = vmatpush.bf16.msrb.mxu0 %v794_v2 }
  0x41   :  { %574 = vmatpush.bf16.msrb.mxu1 %v798_v3 }
  0x44   :  { %562 = vmatpush.bf16.msrb.mxu0 %v786_v18 }
  0x45   :  { %575 = vmatpush.bf16.msrb.mxu1 %v790_v20 }
  0x48   :  { %563 = vmatpush.bf16.msrb.mxu0 %v778_v24 }
  0x49   :  { %576 = vmatpush.bf16.msrb.mxu1 %v782_v26 }
  0x4c   :  { %564 = vmatpush.bf16.msrb.mxu0 %v770_v30 }
  0xb4   :  { %v254_v32 = vpop.f32.mrf.mxu0 }
  0xb5   :  { %v267_v33 = vpop.f32.mrf.mxu1  ;;  %v255_v34 = vadd.f32 %v875_v31, %v254_v32  ;;  %v771_v31 = vld [vmem:[#allocation8 + $0x28] sm:$0xf0] }
  0xb6   :  { %v774_v32 = vor.u32 %v853_v29, %v771_v31 }
  0xb7   :  { %v268_v35 = vadd.f32 %v267_v33, %v255_v34  ;;  %v761_v33 = vld [vmem:[#allocation8 + $0x10] sm:$0xf]  ;;  %v852_v34 = vld [vmem:[#allocation8 + $0x14] sm:$0xf0] }
  0xb8   :  { %577 = vmatpush.bf16.msrb.mxu1 %v774_v32 }
  0xb9   :  { %v273_v36 = vmul.f32 1.442695, %v268_v35  ;;  %v272_v41 = vmul.f32 1.050701, %v268_v35  ;;  %vm271_vm0 = vcmp.gt.f32.partialorder %v268_v35, 0.0 }
  0xba   :  { %v851_v35 = vld [vmem:[#allocation8 + $0x14] sm:$0xf] }
  0xbb   :  { %878 = vpow2.f32 %v273_v36  ;;  %v762_v36 = vor.u32 %v852_v34, %v761_v33 }
  0xbc   :  { %v256_v37 = vpop.f32.mrf.mxu0 }
  0xbd   :  { %v269_v38 = vpop.f32.mrf.mxu1  ;;  %v763_v37 = vld [vmem:[#allocation8 + $0x18] sm:$0xf0]  ;;  %565 = vmatpush.bf16.msrb.mxu0 %v762_v36 }
  0xbe   :  { %v766_v38 = vor.u32 %v851_v35, %v763_v37 }
  0xc0   :  { %578 = vmatpush.bf16.msrb.mxu1 %v766_v38 }
  0xc1   :  { %v879_v39 = vpop.eup %878 }
  0xc2   :  { %v275_v40 = vmul.f32 1.7580993, %v879_v39  ;;  %v753_v39 = vld [vmem:[#allocation8] sm:$0xf] }
  0xc4   :  { %v684_v42 = vadd.f32 -1.7580993, %v275_v40  ;;  %v850_v40 = vld [vmem:[#allocation8 + $0x4] sm:$0xf0] }
  0xc6   :  { %v277_v43 = vsel %vm271_vm0, %v272_v41, %v684_v42  ;;  %v849_v41 = vld [vmem:[#allocation8 + $0x4] sm:$0xf]  ;;  %v754_v42 = vor.u32 %v850_v40, %v753_v39 }
  0xc7   :  { %v278_v44 = vpack.c.bf16 %v277_v43, %v277_v43  ;;  %v755_v43 = vld [vmem:[#allocation8 + $0x8] sm:$0xf0] }
  0xc8   :  { %566 = vmatpush.bf16.msrb.mxu0 %v754_v42 }
  0xc9   :  { %355 = vmatmul.bf16.vlgmr.msra.gmra.mxu2 %v278_v44  ;;  %v758_v44 = vor.u32 %v849_v41, %v755_v43 }
  0xcb   :  { %579 = vmatpush.bf16.msrb.mxu1 %v758_v44 }
 0x14c   :  { %v356_v5 = vpop.f32.mrf.mxu2 }
 0x14d   :  { %v357_v6 = vadd.f32 %v876_v4, %v356_v5 }
 0x14f   :  { %v362_v7 = vmul.f32 1.442695, %v357_v6  ;;  %v361_v11 = vmul.f32 1.050701, %v357_v6  ;;  %vm360_vm1 = vcmp.gt.f32.partialorder %v357_v6, 0.0 }
 0x151   :  { %880 = vpow2.f32 %v362_v7 }
 0x154   :  { %v358_v8 = vpop.f32.mrf.mxu2 }
 0x157   :  { %v881_v9 = vpop.eup %880 }
 0x158   :  { %v364_v10 = vmul.f32 1.7580993, %v881_v9 }
 0x15a   :  { %v717_v12 = vadd.f32 -1.7580993, %v364_v10 }
 0x15c   :  { %v366_v13 = vsel %vm360_vm1, %v361_v11, %v717_v12 }
 0x15d   :  { %v367_v14 = vpack.c.bf16 %v366_v13, %v366_v13 }
 0x15f   :  { %444 = vmatmul.bf16.vlgmr.msra.gmra.mxu3 %v367_v14 }
 0x1e2   :  { %v445_v46 = vpop.f32.mrf.mxu3 }
 0x1e3   :  { %v446_v47 = vadd.f32 %v877_v45, %v445_v46 }
 0x1e5   :  { %v451_v48 = vmul.f32 1.442695, %v446_v47  ;;  %v450_v52 = vmul.f32 1.050701, %v446_v47  ;;  %vm449_vm2 = vcmp.gt.f32.partialorder %v446_v47, 0.0 }
 0x1e7   :  { %882 = vpow2.f32 %v451_v48 }
 0x1ea   :  { %v447_v49 = vpop.f32.mrf.mxu3 }
 0x1ed   :  { %v883_v50 = vpop.eup %882 }
 0x1ee   :  { %v453_v51 = vmul.f32 1.7580993, %v883_v50 }
 0x1f0   :  { %v750_v53 = vadd.f32 -1.7580993, %v453_v51 }
 0x1f2   :  { %v455_v54 = vsel %vm449_vm2, %v450_v52, %v750_v53 }
 0x1f3   :  { %v456_v55 = vpack.c.bf16 %v455_v54, %v455_v54 }
 0x1f5   :  { %567 = vmatmul.bf16.vlgmr.msrb.gmra.mxu0 %v456_v55  ;;  %580 = vmatmul.bf16.vlgmr.msrb.gmra.mxu1 %v456_v55 }
 0x272   :  { %v568_v59 = vpop.f32.mrf.mxu0  ;;  %v581_v60 = vpop.f32.mrf.mxu1 }
 0x273   :  { %v569_v61 = vadd.f32 %v568_v59, %v475_v57  ;;  %v582_v62 = vadd.f32 %v581_v60, %v476_v58 }
 0x275   :  { %v589_v63 = vmul.f32 1.442695, %v569_v61  ;;  %v591_v0 = vmul.f32 1.442695, %v582_v62  ;;  %v587_v7 = vmul.f32 1.050701, %v569_v61 }
 0x276   :  { %vm585_vm3 = vcmp.gt.f32.partialorder %v569_v61, 0.0  ;;  %v588_v9 = vmul.f32 1.050701, %v582_v62  ;;  %vm586_vm4 = vcmp.gt.f32.partialorder %v582_v62, 0.0 }
 0x277   :  { %884 = vpow2.f32 %v589_v63 }
 0x278   :  { %886 = vpow2.f32 %v591_v0 }
 0x27a   :  { %v570_v1 = vpop.f32.mrf.mxu0  ;;  %v583_v2 = vpop.f32.mrf.mxu1 }
 0x27d   :  { %v885_v3 = vpop.eup %884 }
 0x27e   :  { %v887_v4 = vpop.eup %886  ;;  %v593_v5 = vmul.f32 1.7580993, %v885_v3 }
 0x27f   :  { %v594_v6 = vmul.f32 1.7580993, %v887_v4 }
 0x280   :  { %v815_v8 = vadd.f32 -1.7580993, %v593_v5 }
 0x281   :  { %v816_v10 = vadd.f32 -1.7580993, %v594_v6 }
 0x282   :  { %v597_v11 = vsel %vm585_vm3, %v587_v7, %v815_v8 }
 0x283   :  { %v598_v12 = vsel %vm586_vm4, %v588_v9, %v816_v10  ;;  %599 = vst [vmem:[#allocation11] sm:$0xff] %v597_v11 }
 0x284   :  { %600 = vst [vmem:[#allocation11 + $0x8] sm:$0xff] %v598_v12 }
 0x285   :  { %611 = dma.vmem_to_hbm [thread:$0]  %s607_s18, 256, %s609_s20, [#allocation4]  }
 0x286   :  { %1038 = dma.done.wait [#allocation4], 256  }
 0x287   :  { %1039 = vsyncadd [#allocation4], 4294967040 }
 0x288   :  { %616 = vsyncpa [#allocation3], 1 }
 0x289   :  { %617 = vsyncpa [#allocation6], 1 }
 0x28a   :  { %618 = vsyncpa [#allocation9], 1 }
 0x28b   :  { %619 = vsyncpa [#allocation4], 1 }

</bundles_post_ra>
